<compile_context>
chip_gen: v7x
topology: tpu7x:2x2x1
jax: 0.10.0
libtpu: 0.0.40
codegen_flags: <defaults>
</compile_context>

<pallas_src>
import jax
import jax.numpy as jnp
from jax.experimental import pallas as pl
from jax.experimental.pallas import tpu as pltpu


def _unigcn_fused_kernel(x_ref, w1_ref, b1_ref, w2_ref, b2_ref, h_ref, o_ref):
    """Fused 2-layer UniGCN: in-kernel normalizations, build P once, theta->P->ReLU, theta->P."""
    h_b = h_ref[...]                                   # (N, Ep) bf16, 0/1 incidence (zero-padded cols)
    h_f = h_b.astype(jnp.float32)                      # exact (0/1)

    # --- hypergraph structure normalizations (XLU reductions + EUP rsqrt; MXU idle here) ---
    dv = jnp.sum(h_f, axis=1, keepdims=True)           # (N, 1)  vertex degrees d_v
    de = jnp.maximum(jnp.sum(h_f, axis=0, keepdims=True), 1.0)     # (1, Ep) hyperedge sizes |e| (clamped)
    d_tilde = jnp.sum(h_f * dv, axis=0, keepdims=True) / de        # (1, Ep) avg vertex degree per edge
    s_e = jnp.where(d_tilde > 0.0, jax.lax.rsqrt(d_tilde), 1.0) / de   # d_tilde^{-1/2} / |e|
    r_v = jnp.where(dv > 0.0, jax.lax.rsqrt(dv), 0.0)               # (N, 1)  d_v^{-1/2}, kept f32

    # --- P = H · diag(s_e) · H^T   (r_v applied later, in f32, on the (N,128) outputs) ---
    h_s = (h_f * s_e).astype(jnp.bfloat16)              # scale columns of H by s_e
    m = jax.lax.dot_general(                             # (N, N) f32 accumulator
        h_s, h_b, (((1,), (1,)), ((), ())),
        preferred_element_type=jnp.float32)
    p = m.astype(jnp.bfloat16)                           # bf16 operand for the two propagations

    # --- Layer 1: theta -> propagate -> D_v^{-1/2} -> ReLU  (dropout identity in eval) ---
    x1 = jnp.dot(x_ref[...], w1_ref[...], preferred_element_type=jnp.float32) + b1_ref[...]
    x1 = r_v * jnp.dot(p, x1.astype(jnp.bfloat16), preferred_element_type=jnp.float32)
    x1 = jnp.maximum(x1, 0.0)

    # --- Layer 2 (is_last): theta -> propagate -> D_v^{-1/2} ---
    x2 = jnp.dot(x1.astype(jnp.bfloat16), w2_ref[...], preferred_element_type=jnp.float32) + b2_ref[...]
    o_ref[...] = r_v * jnp.dot(p, x2.astype(jnp.bfloat16), preferred_element_type=jnp.float32)


def unigcn_forward(x, h, params):
    """UniGCN forward (two stacked UniGCNConv layers) via one fused Pallas call.

    x: (N, C_in) float32 vertex features.
    h: (N, E) float32 dense incidence matrix (1.0 iff vertex v is in hyperedge e).
    params: ((w1, b1), (w2, b2)) with nn.Linear layouts (C_in, C_hid), (C_hid,), ...
    """
    n, _ = x.shape
    e = h.shape[1]
    (w1, b1), (w2, b2) = params
    c_hid, c_cls = w1.shape[1], w2.shape[1]
    cp = 128                                   # lane-dense padded channel width
    ep = max(128, -(-e // 128) * 128)          # lane-dense padded hyperedge count

    def pad2(a, rows, cols):
        return jnp.pad(a, ((0, rows - a.shape[0]), (0, cols - a.shape[1])))

    # Lane-dense padding; matmul operands in bf16 (H is 0/1 -> exact in bf16).
    x_p = pad2(x, n, cp).astype(jnp.bfloat16)
    w1_p = pad2(w1, cp, cp).astype(jnp.bfloat16)
    w2_p = pad2(w2, cp, cp).astype(jnp.bfloat16)
    b1_p = jnp.pad(b1, (0, cp - c_hid))[None, :].astype(jnp.float32)    # (1, 128)
    b2_p = jnp.pad(b2, (0, cp - c_cls))[None, :].astype(jnp.float32)    # (1, 128)
    h_b = pad2(h, n, ep).astype(jnp.bfloat16)                           # (N, Ep), zero-padded columns

    flops = 2 * n * ep * n + 2 * (2 * n * cp * cp + 2 * n * n * cp)
    bytes_accessed = (
        2 * (n * cp + 2 * cp * cp + n * ep)     # bf16 inputs
        + 4 * 2 * cp                            # f32 biases
        + 4 * n * cp                            # f32 output
    )

    out = pl.pallas_call(
        _unigcn_fused_kernel,
        out_shape=jax.ShapeDtypeStruct((n, cp), jnp.float32),
        in_specs=[pl.BlockSpec(memory_space=pltpu.MemorySpace.VMEM)] * 6,
        out_specs=pl.BlockSpec(memory_space=pltpu.MemorySpace.VMEM),
        cost_estimate=pl.CostEstimate(
            flops=int(flops), transcendentals=int(n + ep), bytes_accessed=int(bytes_accessed)),
    )(x_p, w1_p, b1_p, w2_p, b2_p, h_b)
    return out[:, :c_cls]


def _unigcn_reference(x, h, params):
    """Pure-JAX (f32, highest precision) reference of the same forward, for correctness checks."""
    hp = jax.lax.Precision.HIGHEST
    dv = jnp.sum(h, axis=1)
    de = jnp.maximum(jnp.sum(h, axis=0), 1.0)
    d_tilde = (dv @ h) / de
    s_e = jnp.where(d_tilde > 0.0, 1.0 / jnp.sqrt(d_tilde), 1.0)
    r_v = jnp.where(dv > 0.0, 1.0 / jnp.sqrt(dv), 0.0)
    (w1, b1), (w2, b2) = params

    def layer(xx, w, b, is_last):
        x1 = jnp.dot(xx, w, precision=hp) + b
        y = jnp.dot(h.T, x1, precision=hp) / de[:, None]     # v2e, mean
        y = y * s_e[:, None]                                 # d_tilde^{-1/2}
        out = jnp.dot(h, y, precision=hp) * r_v[:, None]     # e2v sum, then D_v^{-1/2}
        if not is_last:
            out = jnp.maximum(out, 0.0)                      # ReLU (dropout identity in eval)
        return out

    xx = layer(x, w1, b1, False)
    return layer(xx, w2, b2, True)


if __name__ == "__main__":
    key = jax.random.PRNGKey(0)
    N, E = 64, 32                  # vertices, hyperedges
    C_in, C_hid, C_cls = 16, 32, 8

    k_x, k_h, k_w1, k_b1, k_w2, k_b2 = jax.random.split(key, 6)

    X = jax.random.normal(k_x, (N, C_in), jnp.float32)

    # Deterministic incidence matrix; guarantee every hyperedge is non-empty and every
    # vertex belongs to at least one hyperedge.
    H = (jax.random.uniform(k_h, (N, E)) < 0.2).astype(jnp.float32)
    H = H.at[jnp.arange(N), jnp.arange(N) % E].set(1.0)

    # nn.Linear parameters: theta1 (C_in->C_hid), theta2 (C_hid->C_cls).
    w1 = jax.random.normal(k_w1, (C_in, C_hid), jnp.float32) / jnp.sqrt(float(C_in))
    b1 = jax.random.normal(k_b1, (C_hid,), jnp.float32) * 0.01
    w2 = jax.random.normal(k_w2, (C_hid, C_cls), jnp.float32) / jnp.sqrt(float(C_hid))
    b2 = jax.random.normal(k_b2, (C_cls,), jnp.float32) * 0.01
    params = ((w1, b1), (w2, b2))

    out = jax.jit(unigcn_forward)(X, H, params)
    out = jax.block_until_ready(out)

    ref = _unigcn_reference(X, H, params)
    assert out.shape == (N, C_cls)
    # bf16 matmul operands (f32 accumulation) -> compare with a scale-relative tolerance.
    err = float(jnp.max(jnp.abs(out - ref)) / jnp.maximum(jnp.max(jnp.abs(ref)), 1e-6))
    assert err < 2e-2, f"Pallas output mismatch vs JAX reference (rel-to-scale err={err:.3e})"

    print("KERNEL_OK")
</pallas_src>

<mosaic_0001>
module attributes {stable_mosaic.version = 11 : i64} {
  func.func @_unigcn_fused_kernel(%arg0: memref<64x128xbf16, #tpu.memory_space<vmem>>, %arg1: memref<128x128xbf16, #tpu.memory_space<vmem>>, %arg2: memref<1x128xf32, #tpu.memory_space<vmem>>, %arg3: memref<128x128xbf16, #tpu.memory_space<vmem>>, %arg4: memref<1x128xf32, #tpu.memory_space<vmem>>, %arg5: memref<64x128xbf16, #tpu.memory_space<vmem>>, %arg6: memref<64x128xf32, #tpu.memory_space<vmem>>) attributes {dimension_semantics = [], scalar_prefetch = 0 : i64, scratch_operands = 0 : i64, tpu.core_type = #tpu.core_type<tc>} {
    %c0 = arith.constant 0 : index
    %c0_0 = arith.constant 0 : index
    %0 = vector.load %arg5[%c0, %c0_0] : memref<64x128xbf16, #tpu.memory_space<vmem>>, vector<64x128xbf16>
    %1 = arith.extf %0 : vector<64x128xbf16> to vector<64x128xf32>
    %cst = arith.constant dense<0.000000e+00> : vector<64xf32>
    %2 = vector.multi_reduction <add>, %1, %cst [1] : vector<64x128xf32> to vector<64xf32>
    %3 = vector.shape_cast %2 : vector<64xf32> to vector<64x1xf32>
    %cst_1 = arith.constant dense<0.000000e+00> : vector<128xf32>
    %4 = vector.multi_reduction <add>, %1, %cst_1 [0] : vector<64x128xf32> to vector<128xf32>
    %5 = vector.shape_cast %4 : vector<128xf32> to vector<1x128xf32>
    %cst_2 = arith.constant 1.000000e+00 : f32
    %6 = vector.broadcast %cst_2 : f32 to vector<1x128xf32>
    %7 = arith.maximumf %5, %6 : vector<1x128xf32>
    %8 = vector.broadcast %3 : vector<64x1xf32> to vector<64x128xf32>
    %9 = arith.mulf %1, %8 : vector<64x128xf32>
    %cst_3 = arith.constant dense<0.000000e+00> : vector<128xf32>
    %10 = vector.multi_reduction <add>, %9, %cst_3 [0] : vector<64x128xf32> to vector<128xf32>
    %11 = vector.shape_cast %10 : vector<128xf32> to vector<1x128xf32>
    %12 = arith.divf %11, %7 : vector<1x128xf32>
    %cst_4 = arith.constant 0.000000e+00 : f32
    %13 = vector.broadcast %cst_4 : f32 to vector<1x128xf32>
    %14 = arith.cmpf ogt, %12, %13 : vector<1x128xf32>
    %15 = math.rsqrt %12 : vector<1x128xf32>
    %cst_5 = arith.constant 1.000000e+00 : f32
    %16 = vector.broadcast %cst_5 : f32 to vector<1x128xf32>
    %17 = arith.select %14, %15, %16 : vector<1x128xi1>, vector<1x128xf32>
    %18 = arith.divf %17, %7 : vector<1x128xf32>
    %cst_6 = arith.constant 0.000000e+00 : f32
    %19 = vector.broadcast %cst_6 : f32 to vector<64x1xf32>
    %20 = arith.cmpf ogt, %3, %19 : vector<64x1xf32>
    %21 = math.rsqrt %3 : vector<64x1xf32>
    %cst_7 = arith.constant 0.000000e+00 : f32
    %22 = vector.broadcast %cst_7 : f32 to vector<64x1xf32>
    %23 = arith.select %20, %21, %22 : vector<64x1xi1>, vector<64x1xf32>
    %24 = vector.broadcast %18 : vector<1x128xf32> to vector<64x128xf32>
    %25 = arith.mulf %1, %24 : vector<64x128xf32>
    %26 = arith.truncf %25 : vector<64x128xf32> to vector<64x128xbf16>
    %cst_8 = arith.constant dense<0.000000e+00> : vector<64x64xf32>
    %27 = tpu.matmul %26, %0, %cst_8 {dimension_numbers = #tpu.dot_dimension_numbers<[1], [1], [0], [0], [0, 0, 1, 0], [], []>} : vector<64x128xbf16>, vector<64x128xbf16>, vector<64x64xf32> -> vector<64x64xf32>
    %28 = arith.truncf %27 : vector<64x64xf32> to vector<64x64xbf16>
    %c0_9 = arith.constant 0 : index
    %c0_10 = arith.constant 0 : index
    %29 = vector.load %arg0[%c0_9, %c0_10] : memref<64x128xbf16, #tpu.memory_space<vmem>>, vector<64x128xbf16>
    %c0_11 = arith.constant 0 : index
    %c0_12 = arith.constant 0 : index
    %30 = vector.load %arg1[%c0_11, %c0_12] : memref<128x128xbf16, #tpu.memory_space<vmem>>, vector<128x128xbf16>
    %cst_13 = arith.constant dense<0.000000e+00> : vector<64x128xf32>
    %31 = tpu.matmul %29, %30, %cst_13 {dimension_numbers = #tpu.dot_dimension_numbers<[1], [0], [0], [1], [0, 0, 1, 1], [], []>} : vector<64x128xbf16>, vector<128x128xbf16>, vector<64x128xf32> -> vector<64x128xf32>
    %c0_14 = arith.constant 0 : index
    %c0_15 = arith.constant 0 : index
    %32 = vector.load %arg2[%c0_14, %c0_15] : memref<1x128xf32, #tpu.memory_space<vmem>>, vector<1x128xf32>
    %33 = vector.broadcast %32 : vector<1x128xf32> to vector<64x128xf32>
    %34 = arith.addf %31, %33 : vector<64x128xf32>
    %35 = arith.truncf %34 : vector<64x128xf32> to vector<64x128xbf16>
    %cst_16 = arith.constant dense<0.000000e+00> : vector<64x128xf32>
    %36 = tpu.matmul %28, %35, %cst_16 {dimension_numbers = #tpu.dot_dimension_numbers<[1], [0], [0], [1], [0, 0, 1, 1], [], []>} : vector<64x64xbf16>, vector<64x128xbf16>, vector<64x128xf32> -> vector<64x128xf32>
    %37 = vector.broadcast %23 : vector<64x1xf32> to vector<64x128xf32>
    %38 = arith.mulf %37, %36 : vector<64x128xf32>
    %cst_17 = arith.constant 0.000000e+00 : f32
    %39 = vector.broadcast %cst_17 : f32 to vector<64x128xf32>
    %40 = arith.maximumf %38, %39 : vector<64x128xf32>
    %41 = arith.truncf %40 : vector<64x128xf32> to vector<64x128xbf16>
    %c0_18 = arith.constant 0 : index
    %c0_19 = arith.constant 0 : index
    %42 = vector.load %arg3[%c0_18, %c0_19] : memref<128x128xbf16, #tpu.memory_space<vmem>>, vector<128x128xbf16>
    %cst_20 = arith.constant dense<0.000000e+00> : vector<64x128xf32>
    %43 = tpu.matmul %41, %42, %cst_20 {dimension_numbers = #tpu.dot_dimension_numbers<[1], [0], [0], [1], [0, 0, 1, 1], [], []>} : vector<64x128xbf16>, vector<128x128xbf16>, vector<64x128xf32> -> vector<64x128xf32>
    %c0_21 = arith.constant 0 : index
    %c0_22 = arith.constant 0 : index
    %44 = vector.load %arg4[%c0_21, %c0_22] : memref<1x128xf32, #tpu.memory_space<vmem>>, vector<1x128xf32>
    %45 = vector.broadcast %44 : vector<1x128xf32> to vector<64x128xf32>
    %46 = arith.addf %43, %45 : vector<64x128xf32>
    %47 = arith.truncf %46 : vector<64x128xf32> to vector<64x128xbf16>
    %cst_23 = arith.constant dense<0.000000e+00> : vector<64x128xf32>
    %48 = tpu.matmul %28, %47, %cst_23 {dimension_numbers = #tpu.dot_dimension_numbers<[1], [0], [0], [1], [0, 0, 1, 1], [], []>} : vector<64x64xbf16>, vector<64x128xbf16>, vector<64x128xf32> -> vector<64x128xf32>
    %49 = vector.broadcast %23 : vector<64x1xf32> to vector<64x128xf32>
    %50 = arith.mulf %49, %48 : vector<64x128xf32>
    %c0_24 = arith.constant 0 : index
    %c0_25 = arith.constant 0 : index
    %51 = vector.load %arg6[%c0_24, %c0_25] : memref<64x128xf32, #tpu.memory_space<vmem>>, vector<64x128xf32>
    tpu.vector_store %arg6[%c0_24, %c0_25], %50 {strides = array<i32>} : memref<64x128xf32, #tpu.memory_space<vmem>>, vector<64x128xf32>,
    return
  }
}

</mosaic_0001>

<bundles_post_ra>
// kernel: unigcn_forward.1
= control target key start
LH: loop header
LB: loop body
LE: loop exit
PB: predicated region body
PF: predicated region fallthrough
CT: control target
= control target key end

     0   :  { %vm398_vm1 = vcmask 523264   ;;  %s1224_s5 = inlined_call_operand.vmem [shape: bf16[64,128], index: 5, kind: input, shape index: {}]   ;;  %s1225_s1 = inlined_call_operand.vmem [shape: bf16[128,128], index: 1, kind: input, shape index: {}]   ;;  %s1226_s0 = inlined_call_operand.vmem [shape: bf16[64,128], index: 0, kind: input, shape index: {}]   ;;  %s1227_s2 = inlined_call_operand.vmem [shape: f32[1,128], index: 2, kind: input, shape index: {}]   ;;  %s1228_s3 = inlined_call_operand.vmem [shape: bf16[128,128], index: 3, kind: input, shape index: {}]   ;;  %s1229_s4 = inlined_call_operand.vmem [shape: f32[1,128], index: 4, kind: input, shape index: {}]   ;;  %s1230_s6 = inlined_call_operand.vmem [shape: f32[64,128], index: 6, kind: output, shape index: {}]  }
   0x1   :  { %v26_v0 = vld [vmem:[%s1224_s5 + $0x8] sm:$0xff]   ;;  %v24_v1 = vld [vmem:[%s1224_s5] sm:$0xff]   ;;  %v29_v4 = vld [vmem:[%s1224_s5 + $0x10] sm:$0xff]  }
   0x2   :  { %v988_v2 = vunpack.c.l.bf16 %v26_v0  ;;  %v990_v3 = vunpack.c.l.bf16 %v24_v1  ;;  %v899_v5 = vld [vmem:[%s1225_s1] sm:$0xff]   ;;  %v1000_v6 = vunpack.c.h.bf16 %v26_v0  ;;  %v1002_v7 = vunpack.c.h.bf16 %v24_v1  ;;  %v31_v10 = vld [vmem:[%s1224_s5 + $0x18] sm:$0xff]   ;;  %v900_v13 = vld [vmem:[%s1225_s1 + $0x8] sm:$0xff]   ;;  %803 = vmatprep.subr.bf16.mxu0 %v24_v1 }
   0x3   :  { %819 = vmatprep.subr.bf16.mxu1 %v899_v5  ;;  %v1006_v8 = vunpack.c.h.bf16 %v29_v4  ;;  %v1008_v9 = vunpack.c.l.bf16 %v29_v4  ;;  %v1015_v11 = vunpack.c.h.bf16 %v31_v10  ;;  %v1017_v12 = vunpack.c.l.bf16 %v31_v10  ;;  %v901_v14 = vld [vmem:[%s1225_s1 + $0x10] sm:$0xff]   ;;  %v902_v15 = vld [vmem:[%s1225_s1 + $0x18] sm:$0xff]   ;;  %v903_v16 = vld [vmem:[%s1225_s1 + $0x20] sm:$0xff]   ;;  %804 = vmatpush3.bf16.xpose.msra.mxu0 %v24_v1 }
   0x4   :  { %44 = vadd.xlane.f32.xlu1 %v988_v2  ;;  %40 = vadd.xlane.f32.xlu0 %v990_v3  ;;  %v904_v17 = vld [vmem:[%s1225_s1 + $0x28] sm:$0xff]   ;;  %v905_v18 = vld [vmem:[%s1225_s1 + $0x30] sm:$0xff]   ;;  %v907_v19 = vld [vmem:[%s1225_s1 + $0x38] sm:$0xff]   ;;  %v56_v24 = vadd.f32 %v1002_v7, %v990_v3 }
   0x5   :  { %820 = vmatpush3.bf16.msra.mxu1 %v899_v5  ;;  %v908_v20 = vld [vmem:[%s1226_s0] sm:$0xff]   ;;  %v909_v21 = vld [vmem:[%s1226_s0 + $0x8] sm:$0xff]   ;;  %805 = vmatprep.subr.bf16.mxu0 %v26_v0  ;;  %v911_v22 = vld [vmem:[%s1226_s0 + $0x10] sm:$0xff]  }
   0x6   :  { %821 = vmatprep.subr.bf16.mxu1 %v900_v13  ;;  %835 = vmatprep.mubr.bf16.mxu1 %v908_v20  ;;  %v912_v23 = vld [vmem:[%s1226_s0 + $0x18] sm:$0xff]   ;;  %v57_v25 = vadd.f32 %v56_v24, %v988_v2 }
   0x8   :  { %46 = vadd.xlane.f32.xlu1 %v1000_v6  ;;  %42 = vadd.xlane.f32.xlu0 %v1002_v7  ;;  %v58_v26 = vadd.f32 %v57_v25, %v1000_v6 }
   0x9   :  { %822 = vmatpush3.bf16.msra.mxu1 %v900_v13 }
   0xa   :  { %823 = vmatprep.subr.bf16.mxu1 %v901_v14  ;;  %v59_v27 = vadd.f32 %v58_v26, %v1008_v9 }
   0xb   :  { %806 = vmatpush3.bf16.xpose.msra.mxu0 %v26_v0 }
   0xc   :  { %50 = vadd.xlane.f32.xlu1 %v1006_v8  ;;  %48 = vadd.xlane.f32.xlu0 %v1008_v9  ;;  %v60_v28 = vadd.f32 %v59_v27, %v1006_v8 }
   0xd   :  { %824 = vmatpush3.bf16.msra.mxu1 %v901_v14  ;;  %807 = vmatprep.subr.bf16.mxu0 %v29_v4 }
   0xe   :  { %825 = vmatprep.subr.bf16.mxu1 %v902_v15  ;;  %v61_v29 = vadd.f32 %v60_v28, %v1017_v12 }
  0x10   :  { %54 = vadd.xlane.f32.xlu1 %v1015_v11  ;;  %52 = vadd.xlane.f32.xlu0 %v1017_v12  ;;  %v62_v30 = vadd.f32 %v61_v29, %v1015_v11 }
  0x11   :  { %826 = vmatpush3.bf16.msra.mxu1 %v902_v15 }
  0x12   :  { %827 = vmatprep.subr.bf16.mxu1 %v903_v16  ;;  %v63_v31 = vrot.slane %v62_v30, 4 }
  0x13   :  { %808 = vmatpush3.bf16.xpose.msra.mxu0 %v29_v4 }
  0x14   :  { %809 = vmatprep.subr.bf16.mxu0 %v31_v10  ;;  %v64_v32 = vadd.f32 %v63_v31, %v62_v30 }
  0x15   :  { %828 = vmatpush3.bf16.msra.mxu1 %v903_v16 }
  0x16   :  { %829 = vmatprep.subr.bf16.mxu1 %v904_v17  ;;  %v65_v33 = vrot.slane %v64_v32, 2 }
  0x18   :  { %v66_v36 = vadd.f32 %v65_v33, %v64_v32 }
  0x19   :  { %830 = vmatpush3.bf16.msra.mxu1 %v904_v17 }
  0x1a   :  { %831 = vmatprep.subr.bf16.mxu1 %v905_v18  ;;  %v67_v44 = vrot.slane %v66_v36, 1 }
  0x1b   :  { %810 = vmatpush3.bf16.xpose.msra.mxu0 %v31_v10 }
  0x1c   :  { %v68_v51 = vadd.f32 %v67_v44, %v66_v36 }
  0x1d   :  { %832 = vmatpush3.bf16.msra.mxu1 %v905_v18 }
  0x1e   :  { %833 = vmatprep.subr.bf16.mxu1 %v907_v19  ;;  %v69_v58 = vmax.f32 %v68_v51, 1.0  ;;  %v919_v51 = vld [vmem:[%s1228_s3 + $0x20] sm:$0xff]  }
  0x20   :  { %927 = vrcp.f32 %v69_v58 }
  0x21   :  { %834 = vmatpush3.bf16.msra.mxu1 %v907_v19 }
  0x24   :  { %836 = vmatmul.mubr.bf16.vlgmr.msra.gmra.mrb[0].mxu1 %v909_v21 }
  0x25   :  { %839 = vmatprep.mubr.bf16.mxu1 %v911_v22 }
  0x2a   :  { %v928_v4 = vpop.eup %927 }
  0x2c   :  { %840 = vmatmul.mubr.bf16.gmra.mrb[4].mxu1 %v912_v23 }
  0x91   :  { %v1062_v34 = vpop.xlane.xlu1 %44  ;;  %v1064_v35 = vpop.xlane.xlu0 %40 }
  0x92   :  { %v70_v39 = vmul.f32 %v1064_v35, %v990_v3  ;;  %v72_v41 = vmul.f32 %v1062_v34, %v988_v2  ;;  %vm99_vm2 = vcmp.gt.f32.partialorder %v1062_v34, 0.0  ;;  %vm97_vm3 = vcmp.gt.f32.partialorder %v1064_v35, 0.0 }
  0x95   :  { %v1066_v37 = vpop.xlane.xlu1 %46  ;;  %v1068_v38 = vpop.xlane.xlu0 %42 }
  0x96   :  { %v71_v40 = vmul.f32 %v1068_v38, %v1002_v7  ;;  %v73_v42 = vmul.f32 %v1066_v37, %v1000_v6  ;;  %vm100_vm4 = vcmp.gt.f32.partialorder %v1066_v37, 0.0  ;;  %vm98_vm5 = vcmp.gt.f32.partialorder %v1068_v38, 0.0 }
  0x98   :  { %v78_v43 = vadd.f32 %v71_v40, %v70_v39 }
  0x99   :  { %v1078_v45 = vpop.xlane.xlu1 %50  ;;  %v1080_v46 = vpop.xlane.xlu0 %48 }
  0x9a   :  { %v79_v47 = vadd.f32 %v78_v43, %v72_v41  ;;  %v74_v48 = vmul.f32 %v1080_v46, %v1008_v9  ;;  %v75_v49 = vmul.f32 %v1078_v45, %v1006_v8  ;;  %vm101_vm7 = vcmp.gt.f32.partialorder %v1080_v46, 0.0 }
  0x9b   :  { %vm102_vm9 = vcmp.gt.f32.partialorder %v1078_v45, 0.0 }
  0x9c   :  { %v80_v50 = vadd.f32 %v79_v47, %v73_v42  ;;  %v915_v47 = vld [vmem:[%s1228_s3] sm:$0xff]  }
  0x9d   :  { %v1086_v53 = vpop.xlane.xlu0 %52  ;;  %v1088_v54 = vpop.xlane.xlu1 %54  ;;  %859 = vmatprep.subr.bf16.mxu1 %v915_v47 }
  0x9e   :  { %v81_v52 = vadd.f32 %v80_v50, %v74_v48  ;;  %v76_v55 = vmul.f32 %v1086_v53, %v1017_v12  ;;  %v77_v56 = vmul.f32 %v1088_v54, %v1015_v11  ;;  %v916_v48 = vld [vmem:[%s1228_s3 + $0x8] sm:$0xff]   ;;  %860 = vmatpush3.bf16.msra.mxu1 %v915_v47  ;;  %v918_v50 = vld [vmem:[%s1228_s3 + $0x18] sm:$0xff]   ;;  %vm103_vm6 = vcmp.gt.f32.partialorder %v1086_v53, 0.0 }
  0x9f   :  { %861 = vmatprep.subr.bf16.mxu1 %v916_v48  ;;  %vm104_vm8 = vcmp.gt.f32.partialorder %v1088_v54, 0.0 }
  0xa0   :  { %v82_v57 = vadd.f32 %v81_v52, %v75_v49  ;;  %v917_v49 = vld [vmem:[%s1228_s3 + $0x10] sm:$0xff]   ;;  %v920_v52 = vld [vmem:[%s1228_s3 + $0x28] sm:$0xff]  }
  0xa2   :  { %v83_v59 = vadd.f32 %v82_v57, %v76_v55  ;;  %862 = vmatpush3.bf16.msra.mxu1 %v916_v48 }
  0xa3   :  { %863 = vmatprep.subr.bf16.mxu1 %v917_v49 }
  0xa4   :  { %v84_v60 = vadd.f32 %v83_v59, %v77_v56 }
  0xa6   :  { %v85_v61 = vrot.slane %v84_v60, 4  ;;  %864 = vmatpush3.bf16.msra.mxu1 %v917_v49 }
  0xa7   :  { %865 = vmatprep.subr.bf16.mxu1 %v918_v50 }
  0xa8   :  { %v86_v62 = vadd.f32 %v85_v61, %v84_v60 }
  0xaa   :  { %v87_v63 = vrot.slane %v86_v62, 2  ;;  %866 = vmatpush3.bf16.msra.mxu1 %v918_v50 }
  0xab   :  { %867 = vmatprep.subr.bf16.mxu1 %v919_v51 }
  0xac   :  { %v88_v0 = vadd.f32 %v87_v63, %v86_v62 }
  0xae   :  { %v89_v1 = vrot.slane %v88_v0, 1  ;;  %868 = vmatpush3.bf16.msra.mxu1 %v919_v51 }
  0xaf   :  { %869 = vmatprep.subr.bf16.mxu1 %v920_v52 }
  0xb0   :  { %v90_v5 = vadd.f32 %v89_v1, %v88_v0 }
  0xb2   :  { %v92_v10 = vmul.f32 %v928_v4, %v90_v5  ;;  %870 = vmatpush3.bf16.msra.mxu1 %v920_v52  ;;  %v921_v5 = vld [vmem:[%s1228_s3 + $0x30] sm:$0xff]  }
  0xb3   :  { %871 = vmatprep.subr.bf16.mxu1 %v921_v5 }
  0xb4   :  { %929 = vrsqrt.f32 %v92_v10  ;;  %vm93_vm0 = vcmp.gt.f32.partialorder %v92_v10, 0.0  ;;  %v922_v10 = vld [vmem:[%s1228_s3 + $0x38] sm:$0xff]  }
  0xb5   :  { %931 = vrsqrt.f32 %v1062_v34 }
  0xb6   :  { %872 = vmatpush3.bf16.msra.mxu1 %v921_v5  ;;  %933 = vrsqrt.f32 %v1064_v35 }
  0xb7   :  { %873 = vmatprep.subr.bf16.mxu1 %v922_v10  ;;  %935 = vrsqrt.f32 %v1066_v37 }
  0xb8   :  { %937 = vrsqrt.f32 %v1068_v38 }
  0xb9   :  { %939 = vrsqrt.f32 %v1086_v53 }
  0xba   :  { %874 = vmatpush3.bf16.msra.mxu1 %v922_v10  ;;  %941 = vrsqrt.f32 %v1080_v46 }
  0xbb   :  { %943 = vrsqrt.f32 %v1088_v54 }
  0xbc   :  { %945 = vrsqrt.f32 %v1078_v45  ;;  %v742_v45 = vld [vmem:[%s1229_s4] ss:$0 sm:$0xff] }
  0xbe   :  { %v930_v13 = vpop.eup %929 }
  0xbf   :  { %v95_v14 = vsel %vm93_vm0, %v930_v13, 1.0  ;;  %v932_v13 = vpop.eup %931 }
  0xc0   :  { %v96_v15 = vmul.f32 %v928_v4, %v95_v14  ;;  %v934_v14 = vpop.eup %933 }
  0xc2   :  { %v121_v16 = vmul.f32 %v96_v15, %v990_v3  ;;  %v122_v17 = vmul.f32 %v96_v15, %v1002_v7  ;;  %v123_v18 = vmul.f32 %v96_v15, %v988_v2  ;;  %v124_v19 = vmul.f32 %v96_v15, %v1000_v6  ;;  %v725_v2 = vld [vmem:[%s1227_s2] ss:$0 sm:$0xff] }
  0xc3   :  { %v125_v20 = vmul.f32 %v96_v15, %v1008_v9  ;;  %v126_v21 = vmul.f32 %v96_v15, %v1006_v8  ;;  %v127_v25 = vmul.f32 %v96_v15, %v1017_v12  ;;  %v128_v3 = vmul.f32 %v96_v15, %v1015_v11  ;;  %v936_v15 = vpop.eup %935 }
  0xc4   :  { %v129_v22 = vpack.c.bf16 %v122_v17, %v121_v16  ;;  %v130_v23 = vpack.c.bf16 %v124_v19, %v123_v18  ;;  %v938_v16 = vpop.eup %937  ;;  %v1152_v17 = vsel %vm99_vm2, %v932_v13, 0.0 }
  0xc5   :  { %v131_v24 = vpack.c.bf16 %v126_v21, %v125_v20  ;;  %v132_v26 = vpack.c.bf16 %v128_v3, %v127_v25  ;;  %v1156_v20 = vsel %vm97_vm3, %v934_v14, 0.0  ;;  %v1164_v25 = vsel %vm98_vm5, %v938_v16, 0.0 }
  0xc6   :  { %811 = vmatprep.mubr.bf16.mxu0 %v129_v22 }
  0xc7   :  { %812 = vmatmul.mubr.bf16.vlgmr.msra.gmra.mrb[0].mxu0 %v130_v23  ;;  %v1160_v23 = vsel %vm100_vm4, %v936_v15, 0.0 }
  0xc8   :  { %815 = vmatprep.mubr.bf16.mxu0 %v131_v24 }
  0xcf   :  { %816 = vmatmul.mubr.bf16.gmra.mrb[4].mxu0 %v132_v26  ;;  %v940_v26 = vpop.eup %939 }
  0xd0   :  { %v1168_v38 = vsel %vm103_vm6, %v940_v26, 0.0 }
  0xf7   :  { %v837_v6 = vpop.f32.mrb[0].mxu1 }
  0xf8   :  { %v372_v7 = vadd.f32 %v837_v6, %v725_v2  ;;  %v363_v9 = vpop.f32.mrb[1].mxu1 }
  0xf9   :  { %v364_v8 = vadd.f32 %v725_v2, %v363_v9  ;;  %v838_v27 = vpop.f32.mrb[2].mxu1 }
  0xfa   :  { %v375_v28 = vadd.f32 %v838_v27, %v725_v2  ;;  %v366_v29 = vpop.f32.mrb[3].mxu1 }
  0xfb   :  { %v367_v30 = vadd.f32 %v725_v2, %v366_v29 }
  0xfc   :  { %v395_v31 = vpack.c.bf16 %v375_v28, %v372_v7  ;;  %v942_v7 = vpop.eup %941 }
  0xfd   :  { %v394_v32 = vpack.c.bf16 %v367_v30, %v364_v8  ;;  %v944_v8 = vpop.eup %943 }
  0xfe   :  { %v946_v28 = vpop.eup %945 }
  0xff   :  { %v841_v33 = vpop.f32.mrb[4].mxu1  ;;  %843 = vmatprep.subr.bf16.mxu0 %v394_v32 }
 0x100   :  { %v388_v12 = vadd.f32 %v841_v33, %v725_v2  ;;  %v379_v11 = vpop.f32.mrb[5].mxu1  ;;  %844 = vmatpush3.bf16.msra.mxu0 %v394_v32  ;;  %v1173_v32 = vsel %vm101_vm7, %v942_v7, 0.0 }
 0x101   :  { %v380_v36 = vadd.f32 %v725_v2, %v379_v11  ;;  %v842_v39 = vpop.f32.mrb[6].mxu1  ;;  %845 = vmatprep.subr.bf16.mxu0 %v395_v31  ;;  %v1176_v11 = vsel %vm104_vm8, %v944_v8, 0.0 }
 0x102   :  { %v391_v40 = vadd.f32 %v842_v39, %v725_v2  ;;  %v382_v41 = vpop.f32.mrb[7].mxu1  ;;  %v1180_v39 = vsel %vm102_vm9, %v946_v28, 0.0 }
 0x103   :  { %v383_v42 = vadd.f32 %v725_v2, %v382_v41 }
 0x104   :  { %v397_v43 = vpack.c.bf16 %v391_v40, %v388_v12  ;;  %846 = vmatpush3.bf16.msra.mxu0 %v395_v31 }
 0x105   :  { %v396_v44 = vpack.c.bf16 %v383_v42, %v380_v36 }
 0x107   :  { %847 = vmatprep.subr.bf16.mxu0 %v396_v44 }
 0x108   :  { %848 = vmatpush3.bf16.msra.mxu0 %v396_v44 }
 0x109   :  { %849 = vmatprep.subr.bf16.mxu0 %v397_v43 }
 0x10c   :  { %850 = vmatpush3.bf16.msra.mxu0 %v397_v43 }
 0x19a   :  { %v813_v55 = vpop.f32.mrb[0].mxu0 }
 0x19b   :  { %v191_v56 = vpop.f32.mrb[1].mxu0 }
 0x19c   :  { %v814_v57 = vpop.f32.mrb[2].mxu0 }
 0x19d   :  { %v1123_v58 = vpack.c.bf16 %v814_v57, %v813_v55  ;;  %v194_v59 = vpop.f32.mrb[3].mxu0 }
 0x19e   :  { %v222_v60 = vpack.c.bf16 %v194_v59, %v191_v56 }
 0x1a0   :  { %851 = vmatprep.mubr.msk.bf16.mxu0 %vm398_vm1, %v222_v60 }
 0x1a1   :  { %852 = vmatmul.mubr.msk.bf16.vlgmr.msra.gmra.mrb[8].mxu0 %vm398_vm1, %v1123_v58 }
 0x1a2   :  { %v817_v61 = vpop.f32.mrb[4].mxu0 }
 0x1a3   :  { %v207_v62 = vpop.f32.mrb[5].mxu0 }
 0x1a4   :  { %v818_v63 = vpop.f32.mrb[6].mxu0 }
 0x1a5   :  { %v1128_v0 = vpack.c.bf16 %v818_v63, %v817_v61  ;;  %v210_v1 = vpop.f32.mrb[7].mxu0 }
 0x1a6   :  { %v1130_v4 = vpack.c.bf16 %v210_v1, %v207_v62 }
 0x1a8   :  { %855 = vmatprep.mubr.msk.bf16.mxu0 %vm398_vm1, %v1130_v4 }
 0x1a9   :  { %856 = vmatmul.mubr.msk.bf16.gmra.mrb[12].mxu0 %vm398_vm1, %v1128_v0 }
 0x1aa   :  { %891 = vmatprep.mubr.msk.bf16.mxu0 %vm398_vm1, %v222_v60 }
 0x274   :  { %v853_v18 = vpop.f32.mrb[8].mxu0 }
 0x275   :  { %v478_v19 = vmul.f32 %v853_v18, %v1152_v17  ;;  %v445_v21 = vpop.f32.mrb[9].mxu0 }
 0x276   :  { %v476_v22 = vmul.f32 %v445_v21, %v1156_v20  ;;  %v854_v24 = vpop.f32.mrb[10].mxu0 }
 0x277   :  { %v479_v34 = vmul.f32 %v854_v24, %v1160_v23  ;;  %v448_v3 = vpop.f32.mrb[11].mxu0  ;;  %v486_v2 = vmax.f32 %v478_v19, 0.0 }
 0x278   :  { %v477_v35 = vmul.f32 %v448_v3, %v1164_v25  ;;  %v484_v9 = vmax.f32 %v476_v22, 0.0 }
 0x279   :  { %v487_v6 = vmax.f32 %v479_v34, 0.0 }
 0x27a   :  { %v485_v37 = vmax.f32 %v477_v35, 0.0 }
 0x27b   :  { %v493_v27 = vpack.c.bf16 %v487_v6, %v486_v2 }
 0x27c   :  { %v492_v29 = vpack.c.bf16 %v485_v37, %v484_v9  ;;  %v857_v30 = vpop.f32.mrb[12].mxu0 }
 0x27d   :  { %v482_v31 = vmul.f32 %v857_v30, %v1168_v38  ;;  %v461_v33 = vpop.f32.mrb[13].mxu0 }
 0x27e   :  { %v480_v12 = vmul.f32 %v461_v33, %v1173_v32  ;;  %v858_v53 = vpop.f32.mrb[14].mxu0  ;;  %875 = vmatprep.mubr.bf16.mxu1 %v492_v29 }
 0x27f   :  { %v483_v36 = vmul.f32 %v858_v53, %v1176_v11  ;;  %v464_v46 = vpop.f32.mrb[15].mxu0  ;;  %876 = vmatmul.mubr.bf16.vlgmr.msra.gmra.mrb[8].mxu1 %v493_v27  ;;  %v490_v40 = vmax.f32 %v482_v31, 0.0 }
 0x280   :  { %v481_v54 = vmul.f32 %v464_v46, %v1180_v39  ;;  %v488_v42 = vmax.f32 %v480_v12, 0.0 }
 0x281   :  { %v491_v41 = vmax.f32 %v483_v36, 0.0 }
 0x282   :  { %v489_v43 = vmax.f32 %v481_v54, 0.0 }
 0x283   :  { %v495_v44 = vpack.c.bf16 %v491_v41, %v490_v40 }
 0x284   :  { %v494_v47 = vpack.c.bf16 %v489_v43, %v488_v42 }
 0x286   :  { %879 = vmatprep.mubr.bf16.mxu1 %v494_v47 }
 0x287   :  { %880 = vmatmul.mubr.bf16.gmra.mrb[12].mxu1 %v495_v44 }
 0x352   :  { %v877_v48 = vpop.f32.mrb[8].mxu1 }
 0x353   :  { %v601_v49 = vpop.f32.mrb[9].mxu1  ;;  %v610_v51 = vadd.f32 %v877_v48, %v742_v45 }
 0x354   :  { %v878_v50 = vpop.f32.mrb[10].mxu1  ;;  %v602_v56 = vadd.f32 %v742_v45, %v601_v49 }
 0x355   :  { %v613_v52 = vadd.f32 %v878_v50, %v742_v45  ;;  %v604_v55 = vpop.f32.mrb[11].mxu1 }
 0x356   :  { %v605_v57 = vadd.f32 %v742_v45, %v604_v55 }
 0x357   :  { %v633_v59 = vpack.c.bf16 %v613_v52, %v610_v51 }
 0x358   :  { %v632_v60 = vpack.c.bf16 %v605_v57, %v602_v56 }
 0x35a   :  { %v881_v61 = vpop.f32.mrb[12].mxu1  ;;  %883 = vmatprep.subr.bf16.mxu0 %v632_v60 }
 0x35b   :  { %v617_v62 = vpop.f32.mrb[13].mxu1  ;;  %884 = vmatpush3.bf16.msra.mxu0 %v632_v60  ;;  %v626_v1 = vadd.f32 %v881_v61, %v742_v45 }
 0x35c   :  { %v882_v63 = vpop.f32.mrb[14].mxu1  ;;  %885 = vmatprep.subr.bf16.mxu0 %v633_v59  ;;  %v618_v13 = vadd.f32 %v742_v45, %v617_v62 }
 0x35d   :  { %v629_v5 = vadd.f32 %v882_v63, %v742_v45  ;;  %v620_v10 = vpop.f32.mrb[15].mxu1 }
 0x35e   :  { %v621_v14 = vadd.f32 %v742_v45, %v620_v10 }
 0x35f   :  { %v635_v15 = vpack.c.bf16 %v629_v5, %v626_v1  ;;  %886 = vmatpush3.bf16.msra.mxu0 %v633_v59 }
 0x360   :  { %v634_v16 = vpack.c.bf16 %v621_v14, %v618_v13 }
 0x362   :  { %887 = vmatprep.subr.bf16.mxu0 %v634_v16 }
 0x363   :  { %888 = vmatpush3.bf16.msra.mxu0 %v634_v16 }
 0x364   :  { %889 = vmatprep.subr.bf16.mxu0 %v635_v15 }
 0x367   :  { %890 = vmatpush3.bf16.msra.mxu0 %v635_v15 }
 0x36a   :  { %892 = vmatmul.mubr.msk.bf16.vlgmr.msra.gmra.mrb[16].mxu0 %vm398_vm1, %v1123_v58 }
 0x36b   :  { %895 = vmatprep.mubr.msk.bf16.mxu0 %vm398_vm1, %v1130_v4 }
 0x372   :  { %896 = vmatmul.mubr.msk.bf16.gmra.mrb[20].mxu0 %vm398_vm1, %v1128_v0 }
 0x43d   :  { %v893_v18 = vpop.f32.mrb[16].mxu0 }
 0x43e   :  { %v703_v19 = vmul.f32 %v893_v18, %v1152_v17  ;;  %v670_v21 = vpop.f32.mrb[17].mxu0 }
 0x43f   :  { %v701_v22 = vmul.f32 %v670_v21, %v1156_v20  ;;  %v894_v24 = vpop.f32.mrb[18].mxu0 }
 0x440   :  { %711 = vst [vmem:[%s1230_s6 + $0x10] sm:$0xff] %v703_v19  ;;  %v704_v34 = vmul.f32 %v894_v24, %v1160_v23  ;;  %v673_v58 = vpop.f32.mrb[19].mxu0 }
 0x441   :  { %709 = vst [vmem:[%s1230_s6] sm:$0xff] %v701_v22  ;;  %v702_v0 = vmul.f32 %v673_v58, %v1164_v25 }
 0x442   :  { %712 = vst [vmem:[%s1230_s6 + $0x18] sm:$0xff] %v704_v34 }
 0x443   :  { %710 = vst [vmem:[%s1230_s6 + $0x8] sm:$0xff] %v702_v0 }
 0x445   :  { %v897_v4 = vpop.f32.mrb[20].mxu0 }
 0x446   :  { %v707_v17 = vmul.f32 %v897_v4, %v1168_v38  ;;  %v686_v20 = vpop.f32.mrb[21].mxu0 }
 0x447   :  { %v705_v23 = vmul.f32 %v686_v20, %v1173_v32  ;;  %v898_v3 = vpop.f32.mrb[22].mxu0 }
 0x448   :  { %715 = vst [vmem:[%s1230_s6 + $0x30] sm:$0xff] %v707_v17  ;;  %v708_v25 = vmul.f32 %v898_v3, %v1176_v11  ;;  %v689_v35 = vpop.f32.mrb[23].mxu0 }
 0x449   :  { %713 = vst [vmem:[%s1230_s6 + $0x20] sm:$0xff] %v705_v23  ;;  %v706_v26 = vmul.f32 %v689_v35, %v1180_v39 }
 0x44a   :  { %716 = vst [vmem:[%s1230_s6 + $0x38] sm:$0xff] %v708_v25 }
 0x44b   :  { %714 = vst [vmem:[%s1230_s6 + $0x28] sm:$0xff] %v706_v26 }

</bundles_post_ra>
